<compile_context>
chip_gen: v6e
topology: v6e:2x2x1
jax: 0.10.0
libtpu: 0.0.40
codegen_flags: <defaults>
</compile_context>

<pallas_src>
import functools
import math

import jax
import jax.numpy as jnp
from jax.experimental import pallas as pl
from jax.experimental.pallas import tpu as pltpu

_LANE = 128
# ~2 MiB blocks: 4 x block (double-buffered in + out) stays well under the
# smallest default scoped-VMEM budget (v5e: 16 MiB).
_TARGET_BLOCK_BYTES = 2 * 1024 * 1024


def _drop_path_kernel(x_ref, scale_ref, o_ref):
    # x_ref / o_ref: (TB, T) lane-dense VMEM tiles (T large multiple of 128).
    # scale_ref:     (TB, 1) per-sample scale (mask_b / keep_prob).
    o_ref[...] = x_ref[...] * scale_ref[...]


def _pick_tiles(batch, f_pad, itemsize):
    # Batch tile: a sublane-aligned 8 when the batch allows it, else the full
    # batch extent (always a legal block dim).
    if batch > 8 and batch % 8 == 0:
        tb = 8
    else:
        tb = batch
    # Lane tile: the widest multiple of 128 that keeps the block near the
    # target size (lane-dense output -> full-rate unmasked stores).
    max_lanes = max(_LANE, (_TARGET_BLOCK_BYTES // (tb * itemsize)) // _LANE * _LANE)
    t = min(f_pad, max_lanes)
    return tb, t


@functools.partial(jax.jit, static_argnames=("drop_prob",))
def _drop_path_train(x, key, drop_prob):
    keep_prob = 1.0 - drop_prob
    batch = x.shape[0]
    f = math.prod(x.shape[1:]) if x.ndim > 1 else 1

    # Per-sample bernoulli mask: floor(keep_prob + U[0,1)), computed in float32
    # so low-precision dtypes don't shift the effective drop probability.
    u = jax.random.uniform(key, (batch, 1), dtype=jnp.float32)
    mask = jnp.floor(keep_prob + u)
    scale = (mask / keep_prob).astype(x.dtype)  # (B, 1)

    # Flatten non-batch dims into one lane-dense axis; pad lanes to 128.
    x2 = x.reshape(batch, f)
    f_pad = ((f + _LANE - 1) // _LANE) * _LANE
    if f_pad != f:
        x2 = jnp.pad(x2, ((0, 0), (0, f_pad - f)))

    tb, t = _pick_tiles(batch, f_pad, x.dtype.itemsize)
    grid = (pl.cdiv(batch, tb), pl.cdiv(f_pad, t))

    out = pl.pallas_call(
        _drop_path_kernel,
        out_shape=jax.ShapeDtypeStruct((batch, f_pad), x.dtype),
        grid=grid,
        in_specs=[
            pl.BlockSpec((tb, t), lambda i, j: (i, j)),   # x tile
            pl.BlockSpec((tb, 1), lambda i, j: (i, 0)),   # per-sample scale
        ],
        out_specs=pl.BlockSpec((tb, t), lambda i, j: (i, j)),
        input_output_aliases={0: 0},  # reuse x's buffer for the output
        compiler_params=pltpu.CompilerParams(
            dimension_semantics=("parallel", "parallel"),
        ),
    )(x2, scale)

    if f_pad != f:
        out = out[:, :f]
    return out.reshape(x.shape)


def drop_path_pallas(x, drop_prob: float = 0.0, training: bool = False, *, key=None):
    """Pallas implementation of drop_path(x, drop_prob, training)."""
    if drop_prob == 0.0 or not training:
        return x
    if key is None:
        raise ValueError("DropPath in training mode needs a PRNG key")
    return _drop_path_train(x, key, float(drop_prob))


class DropPath:
    """Mirror of the PyTorch module (no parameters)."""

    def __init__(self, drop_prob=None):
        self.drop_prob = 0.0 if drop_prob is None else float(drop_prob)
        self.training = True

    def __call__(self, x, key=None):
        return drop_path_pallas(x, self.drop_prob, self.training, key=key)


if __name__ == "__main__":
    # Small ViT-ish token tensor: batch=2, seq=8, hidden=128.
    B, N, D = 2, 8, 128
    root = jax.random.PRNGKey(0)
    kx, kmask = jax.random.split(root)
    x = jax.random.normal(kx, (B, N, D), dtype=jnp.float32)

    drop_prob = 0.25
    module = DropPath(drop_prob)
    module.training = True

    out = jax.block_until_ready(module(x, key=kmask))

    # Reference (same key / same mask math) in plain JAX.
    keep_prob = 1.0 - drop_prob
    u = jax.random.uniform(kmask, (B, 1), dtype=jnp.float32)
    mask = jnp.floor(keep_prob + u)  # (B, 1)
    ref = x / keep_prob * mask[:, :, None]
    assert out.shape == x.shape and out.dtype == x.dtype
    assert jnp.allclose(out, ref, atol=1e-6, rtol=1e-6)

    # A ragged, non-128-divisible case exercising the padding path (F = 350).
    B2, N2, D2 = 3, 7, 50
    kx2, kmask2 = jax.random.split(jax.random.PRNGKey(1))
    x2 = jax.random.normal(kx2, (B2, N2, D2), dtype=jnp.float32)
    out2 = jax.block_until_ready(drop_path_pallas(x2, 0.5, True, key=kmask2))
    u2 = jax.random.uniform(kmask2, (B2, 1), dtype=jnp.float32)
    mask2 = jnp.floor(0.5 + u2)
    ref2 = x2 / 0.5 * mask2[:, :, None]
    assert jnp.allclose(out2, ref2, atol=1e-6, rtol=1e-6)

    # Eval mode / drop_prob=0 -> identity.
    module.training = False
    out_eval = jax.block_until_ready(module(x))
    assert jnp.array_equal(out_eval, x)

    print("KERNEL_OK")
</pallas_src>

<mosaic_0001>
module attributes {stable_mosaic.version = 11 : i64} {
  func.func @_drop_path_kernel(%arg0: i32, %arg1: i32, %arg2: memref<2x1024xf32, #tpu.memory_space<vmem>>, %arg3: memref<2x1xf32, #tpu.memory_space<vmem>>, %arg4: memref<2x1024xf32, #tpu.memory_space<vmem>>) attributes {dimension_semantics = [#tpu.dimension_semantics<parallel>, #tpu.dimension_semantics<parallel>], iteration_bounds = array<i64: 1, 1>, scalar_prefetch = 0 : i64, scratch_operands = 0 : i64, tpu.core_type = #tpu.core_type<tc>, window_params = [{transform_indices = @transform_0, window_bounds = array<i64: 2, 1024>}, {transform_indices = @transform_1, window_bounds = array<i64: 2, 1>}, {transform_indices = @transform_2, window_bounds = array<i64: 2, 1024>}]} {
    %c0 = arith.constant 0 : index
    %c0_0 = arith.constant 0 : index
    %0 = vector.load %arg2[%c0, %c0_0] : memref<2x1024xf32, #tpu.memory_space<vmem>>, vector<2x1024xf32>
    %c0_1 = arith.constant 0 : index
    %c0_2 = arith.constant 0 : index
    %1 = vector.load %arg3[%c0_1, %c0_2] : memref<2x1xf32, #tpu.memory_space<vmem>>, vector<2x1xf32>
    %2 = vector.broadcast %1 : vector<2x1xf32> to vector<2x1024xf32>
    %3 = arith.mulf %0, %2 : vector<2x1024xf32>
    %c0_3 = arith.constant 0 : index
    %c0_4 = arith.constant 0 : index
    %4 = vector.load %arg4[%c0_3, %c0_4] : memref<2x1024xf32, #tpu.memory_space<vmem>>, vector<2x1024xf32>
    tpu.vector_store %arg4[%c0_3, %c0_4], %3 {strides = array<i32>} : memref<2x1024xf32, #tpu.memory_space<vmem>>, vector<2x1024xf32>,
    return
  }
  func.func @transform_0(%arg0: i32, %arg1: i32) -> (i32, i32) {
    %c0_i32 = arith.constant 0 : i32
    return %arg0, %arg1 : i32, i32
  }
  func.func @transform_1(%arg0: i32, %arg1: i32) -> (i32, i32) {
    %c0_i32 = arith.constant 0 : i32
    %c0_i32_0 = arith.constant 0 : i32
    return %arg0, %c0_i32 : i32, i32
  }
  func.func @transform_2(%arg0: i32, %arg1: i32) -> (i32, i32) {
    %c0_i32 = arith.constant 0 : i32
    return %arg0, %arg1 : i32, i32
  }
}

</mosaic_0001>

<bundles_post_ra>
// kernel: _drop_path_train.1
= control target key start
LH: loop header
LB: loop body
LE: loop exit
PB: predicated region body
PF: predicated region fallthrough
CT: control target
= control target key end

     0   :  { %v37_v0 = vmov 0   ;;  %v38_v2 = vmov 269488144   ;;  %v21_v4 = vlaneseq  ;;  %s69_s1 = inlined_call_operand.vmem [shape: f32[2,1], index: 1, kind: input, shape index: {}]   ;;  %s70_s0 = inlined_call_operand.vmem [shape: f32[2,1024], index: 0, kind: input, shape index: {}, may-alias: {0,2}]   ;;  %s71_s2 = inlined_call_operand.vmem [shape: f32[2,1024], index: 2, kind: output, shape index: {}, may-alias: {0,2}]  }
   0x1   :  { %36 = vset.pattern.permute.xlu0 %v37_v0  ;;  %v13_v1 = vld [vmem:[%s69_s1] sm:$0x3]  ;;  %v19_v3 = vunpack.c.l.s4 %v38_v2  ;;  %v12_v10 = vld [vmem:[%s70_s0 + $0x8] sm:$0xff] }
   0x2   :  { %16 = vperm.xlu0 %36, %v13_v1   ;;  %v22_v6 = vshrl.u32 %v21_v4, 7  ;;  %v11_v9 = vld [vmem:[%s70_s0] sm:$0xff] }
   0x3   :  { %v20_v5 = vunpack.c.0.s8 %v19_v3 }
   0x5   :  { %v23_v7 = vsub.s32 %v20_v5, %v22_v6 }
  0x7d   :  { %v17_v8 = vpop.permute.xlu0 %16 }
  0x7e   :  { %v24_v11 = vrot.slane %v17_v8, %v23_v7 }
  0x80   :  { %v26_v12 = vmul.f32 %v24_v11, %v11_v9  ;;  %v27_v13 = vmul.f32 %v24_v11, %v12_v10 }
  0x82   :  { %28 = vst [vmem:[%s71_s2] sm:$0xff] %v26_v12  ;;  %29 = vst [vmem:[%s71_s2 + $0x8] sm:$0xff] %v27_v13 }

</bundles_post_ra>
